<compile_context>
chip_gen: v7x
topology: tpu7x:2x2x1
jax: 0.10.0
libtpu: 0.0.40
codegen_flags: <defaults>
</compile_context>

<pallas_src>
import functools

import jax
import jax.numpy as jnp
from jax.experimental import pallas as pl
from jax.experimental.pallas import tpu as pltpu


def _npair_part_kernel(sim_ref, row_lab_ref, col_lab_ref, loss_ref, wg_ref):
    # sim_ref:     (TN, M)  similarities for part p = program_id(1), one row tile of anchors
    # row_lab_ref: (TN, 1)  int32 anchor labels for this row tile
    # col_lab_ref: (1,  M)  int32 gallery labels
    # loss_ref:    (TN, 1)  f32 per-row N-pair loss for part p (each block written exactly once)
    # wg_ref:      (TN, M)  f32 Wg tile, accumulated over the inner (part) grid axis
    p = pl.program_id(1)

    sim = sim_ref[...].astype(jnp.float32)                       # (TN, M)
    pos = row_lab_ref[...] == col_lab_ref[...]                   # (TN, M) bool, mask built in-kernel

    # ---- Wg = sim.sum over parts: resident-output accumulation over the "arbitrary" axis ----
    @pl.when(p == 0)
    def _init_wg():
        wg_ref[...] = sim

    @pl.when(p != 0)
    def _acc_wg():
        wg_ref[...] += sim

    # ---- per-part multi-class N-pair loss (numerically stabilized) ----
    posf = pos.astype(jnp.float32)
    pos_cnt = jnp.maximum(jnp.sum(posf, axis=-1, keepdims=True), 1.0)         # (TN, 1)
    w_pos = jnp.sum(sim * posf, axis=-1, keepdims=True) / pos_cnt             # (TN, 1)

    a = sim - w_pos                                                           # (TN, M)
    a_neg = jnp.where(pos, -jnp.inf, a)                                       # negatives only
    m = jnp.maximum(jnp.max(a_neg, axis=-1, keepdims=True), 0.0)              # (TN, 1), >= 0
    z = jnp.sum(jnp.where(pos, 0.0, jnp.exp(a - m)), axis=-1, keepdims=True)  # (TN, 1)
    # log(1 + sum_neg exp(a)) = m + log(exp(-m) + sum_neg exp(a - m))
    loss_ref[...] = m + jnp.log(jnp.exp(-m) + z)


def _pick_tile(n, preferred):
    """Largest tile <= preferred that divides n and satisfies the sublane constraint."""
    if n % preferred == 0:
        return preferred
    for t in (256, 128, 64, 32, 16, 8):
        if t < n and n % t == 0:
            return t
    return n


@functools.partial(jax.jit, static_argnames=("tile_n",))
def multi_part_npair_loss(Ws, targets, *, tile_n=128):
    """Ws: (2, N, M, P) stacked (sim_mat, score_mat); targets: (N,) int labels.

    Returns (part_losses, Wg): part_losses is a (P,) array of per-part losses
    (index it to recover the per-part list the PyTorch module returns);
    Wg = sim_mat.sum(over parts), as computed inside the reference _forward().
    """
    sim_mat = Ws[0]                                   # (N, M, P); score_mat = Ws[1] unused (as in reference)
    N, M, P = sim_mat.shape
    assert M == N and targets.shape[0] == N, "anchor/gallery batch must match the label vector"

    # Present parts on the leading axis so each part's (N, M) matrix is lane-dense.
    # TODO(synk): ideally the upstream producer emits (P, N, M) (and bf16) directly so this
    # transpose does not cost an extra HBM pass; the kernel already casts per-tile.
    sim_pmn = jnp.transpose(sim_mat, (2, 0, 1))

    labels = targets.astype(jnp.int32)
    row_lab = labels.reshape(N, 1)
    col_lab = labels.reshape(1, M)

    tn = _pick_tile(N, tile_n)
    nt = N // tn

    loss_rows, wg = pl.pallas_call(
        _npair_part_kernel,
        out_shape=(
            jax.ShapeDtypeStruct((P, N, 1), jnp.float32),
            jax.ShapeDtypeStruct((N, M), jnp.float32),
        ),
        grid=(nt, P),
        in_specs=[
            pl.BlockSpec((None, tn, M), lambda n, p: (p, n, 0)),   # one part, one anchor-row tile
            pl.BlockSpec((tn, 1), lambda n, p: (n, 0)),            # anchor labels (tiny)
            pl.BlockSpec((1, M), lambda n, p: (0, 0)),             # gallery labels (tiny)
        ],
        out_specs=(
            pl.BlockSpec((None, tn, 1), lambda n, p: (p, n, 0)),   # per-row loss, written once
            pl.BlockSpec((tn, M), lambda n, p: (n, 0)),            # Wg tile, accumulated over p
        ),
        compiler_params=pltpu.CompilerParams(
            # N tiles are fully independent (shardable across v7x's 2 TCs); the part axis
            # carries the Wg accumulation so it must stay sequential.
            dimension_semantics=("parallel", "arbitrary"),
            # Double-buffered (tn, M) tiles + (TN, M)-sized temporaries stay far below
            # v7x's 64 MiB physical VMEM (and v5e/v6e's 128 MiB).
            vmem_limit_bytes=32 * 1024 * 1024,
        ),
    )(sim_pmn, row_lab, col_lab)

    part_losses = jnp.mean(loss_rows[:, :, 0], axis=1)             # (P,)
    return part_losses, wg


def _reference(Ws, targets):
    """Pure-JAX reference (unstabilized formula) for correctness checking."""
    sim = Ws[0].astype(jnp.float32)                                # (N, M, P)
    wg = sim.sum(axis=2)
    posf = (targets[:, None] == targets[None, :]).astype(jnp.float32)
    cnt = jnp.maximum(posf.sum(-1, keepdims=True), 1.0)
    losses = []
    for p_i in range(sim.shape[2]):
        w = sim[:, :, p_i]
        w_pos = (w * posf).sum(-1, keepdims=True) / cnt
        z = ((1.0 - posf) * jnp.exp(w - w_pos)).sum(-1)
        losses.append(jnp.mean(jnp.log1p(z)))
    return jnp.stack(losses), wg


if __name__ == "__main__":
    key = jax.random.PRNGKey(0)
    k1, k2 = jax.random.split(key)

    # --- small config matching the module's expected input: Ws = (2, N, N, P) ---
    N, P = 8, 4
    Ws = jax.random.normal(k1, (2, N, N, P), dtype=jnp.float32)
    targets = jnp.array([0, 0, 1, 1, 2, 2, 3, 3], dtype=jnp.int32)

    part_losses, wg = multi_part_npair_loss(Ws, targets)
    part_losses = jax.block_until_ready(part_losses)
    wg = jax.block_until_ready(wg)

    ref_losses, ref_wg = _reference(Ws, targets)
    assert part_losses.shape == (P,)
    assert wg.shape == (N, N)
    assert bool(jnp.all(jnp.isfinite(part_losses)))
    assert jnp.allclose(part_losses, ref_losses, rtol=1e-5, atol=1e-5)
    assert jnp.allclose(wg, ref_wg, rtol=1e-5, atol=1e-5)

    # --- exercise the tiled multi-block path: grid = (N//tn, P) with tn < N ---
    N2, P2 = 32, 4
    Ws2 = jax.random.normal(k2, (2, N2, N2, P2), dtype=jnp.float32)
    targets2 = (jnp.arange(N2, dtype=jnp.int32) // 2).astype(jnp.int32)

    part_losses2, wg2 = multi_part_npair_loss(Ws2, targets2, tile_n=8)
    part_losses2 = jax.block_until_ready(part_losses2)
    wg2 = jax.block_until_ready(wg2)

    ref_losses2, ref_wg2 = _reference(Ws2, targets2)
    assert jnp.allclose(part_losses2, ref_losses2, rtol=1e-5, atol=1e-5)
    assert jnp.allclose(wg2, ref_wg2, rtol=1e-5, atol=1e-5)

    print("KERNEL_OK")
</pallas_src>

<mosaic_0001>
module attributes {stable_mosaic.version = 11 : i64} {
  func.func @_npair_part_kernel(%arg0: i32, %arg1: i32, %arg2: memref<1x8x8xf32, #tpu.memory_space<vmem>>, %arg3: memref<8x1xi32, #tpu.memory_space<vmem>>, %arg4: memref<1x8xi32, #tpu.memory_space<vmem>>, %arg5: memref<1x8x1xf32, #tpu.memory_space<vmem>>, %arg6: memref<8x8xf32, #tpu.memory_space<vmem>>) attributes {dimension_semantics = [#tpu.dimension_semantics<parallel>, #tpu.dimension_semantics<arbitrary>], iteration_bounds = array<i64: 1, 4>, scalar_prefetch = 0 : i64, scratch_operands = 0 : i64, tpu.core_type = #tpu.core_type<tc>, window_params = [{transform_indices = @transform_0, window_bounds = array<i64: 1, 8, 8>}, {transform_indices = @transform_1, window_bounds = array<i64: 8, 1>}, {pipeline_mode = #tpu.pipeline_mode<synchronous>, transform_indices = @transform_2, window_bounds = array<i64: 1, 8>}, {transform_indices = @transform_3, window_bounds = array<i64: 1, 8, 1>}, {transform_indices = @transform_4, window_bounds = array<i64: 8, 8>}]} {
    %c0 = arith.constant 0 : index
    %c0_0 = arith.constant 0 : index
    %c0_1 = arith.constant 0 : index
    %0 = vector.load %arg2[%c0, %c0_0, %c0_1] : memref<1x8x8xf32, #tpu.memory_space<vmem>>, vector<1x8x8xf32>
    %1 = vector.shape_cast %0 : vector<1x8x8xf32> to vector<8x8xf32>
    %c0_2 = arith.constant 0 : index
    %c0_3 = arith.constant 0 : index
    %2 = vector.load %arg3[%c0_2, %c0_3] : memref<8x1xi32, #tpu.memory_space<vmem>>, vector<8x1xi32>
    %c0_4 = arith.constant 0 : index
    %c0_5 = arith.constant 0 : index
    %3 = vector.load %arg4[%c0_4, %c0_5] : memref<1x8xi32, #tpu.memory_space<vmem>>, vector<1x8xi32>
    %4 = vector.broadcast %2 : vector<8x1xi32> to vector<8x8xi32>
    %5 = vector.broadcast %3 : vector<1x8xi32> to vector<8x8xi32>
    %6 = arith.cmpi eq, %4, %5 : vector<8x8xi32>
    %c0_i32 = arith.constant 0 : i32
    %7 = arith.cmpi eq, %arg1, %c0_i32 : i32
    %8 = arith.extui %7 : i1 to i32
    %c0_i32_6 = arith.constant 0 : i32
    %9 = arith.cmpi ne, %8, %c0_i32_6 : i32
    scf.if %9 {
      %c0_20 = arith.constant 0 : index
      %c0_21 = arith.constant 0 : index
      %47 = vector.load %arg6[%c0_20, %c0_21] : memref<8x8xf32, #tpu.memory_space<vmem>>, vector<8x8xf32>
      tpu.vector_store %arg6[%c0_20, %c0_21], %1 {strides = array<i32>} : memref<8x8xf32, #tpu.memory_space<vmem>>, vector<8x8xf32>,
    } else {
    }
    %c0_i32_7 = arith.constant 0 : i32
    %10 = arith.cmpi ne, %arg1, %c0_i32_7 : i32
    %11 = arith.extui %10 : i1 to i32
    %c0_i32_8 = arith.constant 0 : i32
    %12 = arith.cmpi ne, %11, %c0_i32_8 : i32
    scf.if %12 {
      %c0_20 = arith.constant 0 : index
      %c0_21 = arith.constant 0 : index
      %47 = vector.load %arg6[%c0_20, %c0_21] : memref<8x8xf32, #tpu.memory_space<vmem>>, vector<8x8xf32>
      %48 = arith.addf %47, %1 : vector<8x8xf32>
      %c0_22 = arith.constant 0 : index
      %c0_23 = arith.constant 0 : index
      %49 = vector.load %arg6[%c0_22, %c0_23] : memref<8x8xf32, #tpu.memory_space<vmem>>, vector<8x8xf32>
      tpu.vector_store %arg6[%c0_22, %c0_23], %48 {strides = array<i32>} : memref<8x8xf32, #tpu.memory_space<vmem>>, vector<8x8xf32>,
    } else {
    }
    %13 = arith.extui %6 : vector<8x8xi1> to vector<8x8xi32>
    %14 = arith.sitofp %13 : vector<8x8xi32> to vector<8x8xf32>
    %cst = arith.constant dense<0.000000e+00> : vector<8xf32>
    %15 = vector.multi_reduction <add>, %14, %cst [1] : vector<8x8xf32> to vector<8xf32>
    %16 = vector.shape_cast %15 : vector<8xf32> to vector<8x1xf32>
    %cst_9 = arith.constant 1.000000e+00 : f32
    %17 = vector.broadcast %cst_9 : f32 to vector<8x1xf32>
    %18 = arith.maximumf %16, %17 : vector<8x1xf32>
    %19 = arith.mulf %1, %14 : vector<8x8xf32>
    %cst_10 = arith.constant dense<0.000000e+00> : vector<8xf32>
    %20 = vector.multi_reduction <add>, %19, %cst_10 [1] : vector<8x8xf32> to vector<8xf32>
    %21 = vector.shape_cast %20 : vector<8xf32> to vector<8x1xf32>
    %22 = arith.divf %21, %18 : vector<8x1xf32>
    %23 = vector.broadcast %22 : vector<8x1xf32> to vector<8x8xf32>
    %24 = arith.subf %1, %23 : vector<8x8xf32>
    %cst_11 = arith.constant 0xFF800000 : f32
    %25 = vector.broadcast %cst_11 : f32 to vector<8x8xf32>
    %26 = arith.select %6, %25, %24 : vector<8x8xi1>, vector<8x8xf32>
    %cst_12 = arith.constant dense<0xFF800000> : vector<8xf32>
    %27 = vector.multi_reduction <maximumf>, %26, %cst_12 [1] : vector<8x8xf32> to vector<8xf32>
    %28 = vector.shape_cast %27 : vector<8xf32> to vector<8x1xf32>
    %cst_13 = arith.constant 0.000000e+00 : f32
    %29 = vector.broadcast %cst_13 : f32 to vector<8x1xf32>
    %30 = arith.maximumf %28, %29 : vector<8x1xf32>
    %31 = vector.broadcast %30 : vector<8x1xf32> to vector<8x8xf32>
    %32 = arith.subf %24, %31 : vector<8x8xf32>
    %33 = math.exp %32 : vector<8x8xf32>
    %cst_14 = arith.constant 0.000000e+00 : f32
    %34 = vector.broadcast %cst_14 : f32 to vector<8x8xf32>
    %35 = arith.select %6, %34, %33 : vector<8x8xi1>, vector<8x8xf32>
    %cst_15 = arith.constant dense<0.000000e+00> : vector<8xf32>
    %36 = vector.multi_reduction <add>, %35, %cst_15 [1] : vector<8x8xf32> to vector<8xf32>
    %37 = vector.shape_cast %36 : vector<8xf32> to vector<8x1xf32>
    %cst_16 = arith.constant 0.000000e+00 : f32
    %38 = vector.broadcast %cst_16 : f32 to vector<8x1xf32>
    %39 = arith.subf %38, %30 : vector<8x1xf32>
    %40 = math.exp %39 : vector<8x1xf32>
    %41 = arith.addf %40, %37 : vector<8x1xf32>
    %42 = math.log %41 : vector<8x1xf32>
    %43 = arith.addf %30, %42 : vector<8x1xf32>
    %c0_17 = arith.constant 0 : index
    %c0_18 = arith.constant 0 : index
    %c0_19 = arith.constant 0 : index
    %44 = vector.load %arg5[%c0_17, %c0_18, %c0_19] : memref<1x8x1xf32, #tpu.memory_space<vmem>>, vector<1x8x1xf32>
    %45 = vector.shape_cast %44 : vector<1x8x1xf32> to vector<8x1xf32>
    %46 = vector.shape_cast %43 : vector<8x1xf32> to vector<1x8x1xf32>
    tpu.vector_store %arg5[%c0_17, %c0_18, %c0_19], %46 {strides = array<i32>} : memref<1x8x1xf32, #tpu.memory_space<vmem>>, vector<1x8x1xf32>,
    return
  }
  func.func @transform_0(%arg0: i32, %arg1: i32) -> (i32, i32, i32) {
    %c0_i32 = arith.constant 0 : i32
    %c0_i32_0 = arith.constant 0 : i32
    return %arg1, %arg0, %c0_i32 : i32, i32, i32
  }
  func.func @transform_1(%arg0: i32, %arg1: i32) -> (i32, i32) {
    %c0_i32 = arith.constant 0 : i32
    %c0_i32_0 = arith.constant 0 : i32
    return %arg0, %c0_i32 : i32, i32
  }
  func.func @transform_2(%arg0: i32, %arg1: i32) -> (i32, i32) {
    %c0_i32 = arith.constant 0 : i32
    %c0_i32_0 = arith.constant 0 : i32
    %c0_i32_1 = arith.constant 0 : i32
    return %c0_i32, %c0_i32_0 : i32, i32
  }
  func.func @transform_3(%arg0: i32, %arg1: i32) -> (i32, i32, i32) {
    %c0_i32 = arith.constant 0 : i32
    %c0_i32_0 = arith.constant 0 : i32
    return %arg1, %arg0, %c0_i32 : i32, i32, i32
  }
  func.func @transform_4(%arg0: i32, %arg1: i32) -> (i32, i32) {
    %c0_i32 = arith.constant 0 : i32
    %c0_i32_0 = arith.constant 0 : i32
    return %arg0, %c0_i32 : i32, i32
  }
}

</mosaic_0001>

<bundles_post_ra>
// kernel: multi_part_npair_loss.1
= control target key start
LH: loop header
LB: loop body
LE: loop exit
PB: predicated region body
PF: predicated region fallthrough
CT: control target
= control target key end

     0   :  { %10 = vsyncpa [#allocation3], 0  ;;  %s563_s15 = smov 0   ;;  %s565_s16 = smov 0   ;;  %s647_s0 = inlined_call_operand.vmem [shape: f32[4,8,8], index: 0, kind: input, shape index: {}]   ;;  %s648_s1 = inlined_call_operand.vmem [shape: s32[8,1], index: 1, kind: input, shape index: {}]   ;;  %s649_s2 = inlined_call_operand.vmem [shape: s32[1,8], index: 2, kind: input, shape index: {}]   ;;  %s650_s3 = inlined_call_operand.vmem [shape: f32[4,8,1], index: 3, kind: output, shape index: {0}]   ;;  %s651_s4 = inlined_call_operand.hbm [shape: f32[8,8], index: 4, kind: output, shape index: {1}]  }
   0x1   :  { %s567_s17 = smov 0  }
   0x2 LB: > { %s423_s18 = sadd.s32 4294967295, %s533_s17   ;;  %s25_s19 = sadd.s32 1, %s529_s16  ;;  %s533_s17 = sphi %s567_s17, %s16_s17   ;;  %s529_s16 = sphi %s565_s16, %s654_s16   ;;  %s525_s15 = sphi %s563_s15, %s653_s15  }
   0x3   : > { %p26_p0 = scmp.ge.s32.totalorder %s25_s19, 4  ;;  %p428_p1 = scmp.ge.s32.totalorder %s533_s17, 1 }
   0x4   : > { %p193_p2 = scmp.lt.s32.totalorder %s533_s17, 5 }
   0x5   : > { %s656_s19 = smov (%p26_p0, %s25_s19), 0 }
   0x6   : > { %p194_p3 = pnand %p428_p1, %p193_p2 }
   0x7   : > { %v246_v0 = vld [vmem:[%s648_s1] sm:$0xff] (!%p194_p3)  ;;  %p227_p4 = scmp.lt.s32.totalorder (!%p194_p3), %s525_s15, 3  ;;  %v535_v1 = vmov (!%p194_p3), 0   ;;  %p432_p5 = scmp.ne.s32.totalorder (!%p194_p3), %s525_s15, 0 }
   0x8   : > { %197 = sbr.rel (%p194_p3) target bundleno = 634 (0x27a), region = 32  ;;  %472 = vset.pattern.permute.xlu0 (!%p194_p3), %v535_v1  ;;  %v431_v3 = vld [vmem:[%s649_s2] ss:$0 sm:$0xff] (!%p194_p3) }
   0x9   : > { %249 = vperm.xlu0 (!%p194_p3), %472, %v246_v0  }
   0xf   : > { %s228_s22 = scalar_select %p227_p4, %s525_s15, 3 }
  0x10   : > { %vm260_vm1 = vcmask (!%p432_p5), 64512  }
  0x11   : > { %s429_s23 = sshll.u32 %s228_s22, 3 }
  0x12   : > { %s233_s26 = scalar_lea.vmem %s647_s0, %s429_s23  ;;  %s595_s29 = scalar_lea.vmem %s650_s3, %s429_s23 }
  0x13   : > { %v245_v2 = vld [vmem:[%s233_s26] sm:$0xff] }
  0x14   : > { %261 = vst.msk [vmem:[#allocation2] sm:$0xff] (!%p432_p5), %vm260_vm1, %v245_v2 }
  0x83   : > { %259 = sbr.rel (%p432_p5) target bundleno = 138 (0x8a), region = 36 }
  0x88   : > { %v250_v4 = vpop.permute.xlu0 %249 }
  0x89   : > { %vm255_vm0 = vcmp.eq.s32.totalorder %v250_v4, %v431_v3 }
  0x8a PF: > { %p433_p6 = scmp.eq.s32.totalorder %s525_s15, 0 }
  0x8b   : > { %v266_v5 = vld [vmem:[#allocation2] sm:$0xff] (!%p433_p6)  ;;  %vm268_vm2 = vcmask (!%p433_p6), 64512  }
  0x8c   : > { %265 = sbr.rel (%p433_p6) target bundleno = 147 (0x93), region = 40  ;;  %v267_v6 = vadd.f32 (!%p433_p6), %v266_v5, %v245_v2 }
  0x8e   : > { %269 = vst.msk [vmem:[#allocation2] sm:$0xff] (!%p433_p6), %vm268_vm2, %v267_v6 }
  0x93 PF: > { %vm272_vm3 = vcmask 64512   ;;  %v536_v7 = vmov 0.0   ;;  %p611_p7 = scmp.eq.s32.totalorder %s423_s18, 3  ;;  %s537_s7 = smov [#allocation2]  }
  0x94   : > { %v434_v8 = vsel %vm255_vm0, 1.0, %v536_v7  ;;  %s324_s8 = sshll.u32 %s537_s7, 4  ;;  %s325_s8 = int_to_ptr.vmem [resolvable:$true] %s324_s8 }
  0x95   : > { %v273_v9 = vsel %vm272_vm3, %v434_v8, 0.0  ;;  %v277_v10 = vmul.f32 %v434_v8, %v245_v2  ;;  %s481_s9 = scalar_lea.vmem %s325_s8, 128  ;;  %p488_p11 = scmp.lt.s32.totalorder %s325_s8, %s325_s8 }
  0x96   : > { %274 = vadd.xlane.f32.xlu0 %v273_v9  ;;  %p482_p8 = scmp.ne.s32.totalorder %s325_s8, %s481_s9  ;;  %p489_p12 = scmp.lt.s32.totalorder %s481_s9, %s481_s9 }
  0x97   : > { %v278_v11 = vsel %vm272_vm3, %v277_v10, 0.0 }
  0x98   : > { %p483_p9 = pnand %p482_p8, %p611_p7  ;;  %p490_p13 = por %p489_p12, %p488_p11 }
  0x9a   : > { %279 = vadd.xlane.f32.xlu0 %v278_v11  ;;  %p484_p10 = pneg %p483_p9 }
  0x9c   : > { %p491_p0 = pnand %p490_p13, %p484_p10 }
 0x123   : > { %v275_v12 = vpop.xlane.xlu0 %274 }
 0x124   : > { %v276_v13 = vmax.f32 %v275_v12, 1.0 }
 0x126   : > { %473 = vrcp.f32 %v276_v13 }
 0x127   : > { %v280_v14 = vpop.xlane.xlu0 %279 }
 0x130   : > { %v474_v15 = vpop.eup %473 }
 0x131   : > { %v282_v16 = vmul.f32 %v474_v15, %v280_v14 }
 0x133   : > { %v283_v17 = vsub.f32 %v245_v2, %v282_v16 }
 0x135   : > { %v284_v18 = vsel %vm255_vm0, -inf, %v283_v17 }
 0x136   : > { %v285_v19 = vsel %vm272_vm3, %v284_v18, -inf }
 0x137   : > { %286 = vmax.xlane.f32.xlu1 %v285_v19 }
 0x1c4   : > { %v287_v20 = vpop.xlane.xlu1 %286 }
 0x1c5   : > { %v288_v21 = vmax.f32 %v287_v20, 0.0 }
 0x1c7   : > { %v289_v22 = vsub.f32 %v283_v17, %v288_v21 }
 0x1c9   : > { %v290_v23 = vmul.f32 1.442695, %v289_v22 }
 0x1cb   : > { %475 = vpow2.f32 %v290_v23 }
 0x1d5   : > { %v476_v24 = vpop.eup %475 }
 0x1d6   : > { %v292_v25 = vsel %vm255_vm0, 0.0, %v476_v24 }
 0x1d7   : > { %v293_v26 = vsel %vm272_vm3, %v292_v25, 0.0 }
 0x1d8   : > { %294 = vadd.xlane.f32.xlu1 %v293_v26 }
 0x1d9   : > { %494 = shalt.err (!%p491_p0)
}
 0x1da   : > { %s495_s12 = scalar_lea.hbm %s651_s4, 128 }
 0x1db   : > { %p496_p1 = scmp.ne.s32.totalorder %s651_s4, %s495_s12  ;;  %p501_p4 = scmp.lt.u32.totalorder %s495_s12, %s651_s4 }
 0x1dd   : > { %p497_p2 = pnand %p496_p1, %p611_p7 }
 0x1df   : > { %p498_p3 = pneg %p497_p2 }
 0x1e1   : > { %p503_p5 = pnand %p501_p4, %p498_p3 }
 0x1e3   : > { %506 = shalt.err (!%p503_p5)
}
 0x1e4   : > { %440 = dma.vmem_to_hbm [thread:$0]  (%p611_p7), %s325_s8, 128, %s651_s4, [#allocation3]   ;;  %v296_v27 = vsub.f32 0.0, %v288_v21  ;;  %vm303_vm4 = vcmask 7168  }
 0x1e6   : > { %v297_v28 = vmul.f32 1.442695, %v296_v27 }
 0x1e8   : > { %477 = vpow2.f32 %v297_v28 }
 0x1f2   : > { %v478_v29 = vpop.eup %477 }
 0x265   : > { %v295_v30 = vpop.xlane.xlu1 %294 }
 0x266   : > { %v299_v31 = vadd.f32 %v478_v29, %v295_v30 }
 0x268   : > { %479 = vlog2.f32 %v299_v31 }
 0x272   : > { %v480_v32 = vpop.eup %479 }
 0x273   : > { %v301_v33 = vmul.f32 0.6931472, %v480_v32 }
 0x275   : > { %v302_v34 = vadd.f32 %v301_v33, %v288_v21 }
 0x277   : > { %304 = vst.msk [vmem:[%s595_s29] sm:$0xff] %vm303_vm4, %v302_v34 }
 0x278   : > { %520 = dma.done.wait (%p611_p7), [#allocation3], 128  }
 0x279   : > { %522 = vsyncadd (%p611_p7), [#allocation3], 4294967168 }
 0x27a PF: > { %s16_s17 = sadd.s32 1, %s533_s17   ;;  %s653_s15 = smov %s529_s16 }
 0x27b   : > { %p13_p6 = scmp.ge.s32.totalorder %s16_s17, 6   ;;  %s654_s16 = smov %s656_s19 }
 0x27d   :  { %15 = sbr.rel (!%p13_p6) target bundleno = 2 (0x2), region = 83 }
 0x284   :  { %347 = vsyncpa [#allocation3], 1 }
 0x285   :  { %349 = vsyncpa [#allocation3 + $0x1], 1 }

</bundles_post_ra>
